<compile_context>
chip_gen: v6e
topology: v6e:2x2x1
jax: 0.10.0
libtpu: 0.0.40
codegen_flags: <defaults>
</compile_context>

<pallas_src>
import functools

import jax
import jax.numpy as jnp
from jax import lax
from jax.experimental import pallas as pl
from jax.experimental.pallas import tpu as pltpu


_LANE = 128
_SUBLANE = 8
_MAX_TK = 2048


def _round_up(n: int, m: int) -> int:
    return ((n + m - 1) // m) * m


def _vmem_budget_and_limit():
    """Generation-aware (budget_for_tiling, vmem_limit_bytes)."""
    cap = 64 << 20
    try:
        info = pltpu.get_tpu_info()
        cap = int(getattr(info, "vmem_capacity_bytes", cap))
    except Exception:
        pass
    if cap >= (96 << 20):            # v5e / v6e: 128 MiB physical VMEM per core
        return 64 << 20, 96 << 20
    return 32 << 20, 48 << 20        # v7x: 64 MiB physical VMEM per TC


def _choose_tiling(m: int, k: int, budget: int):
    """Pick (Mp, Kp, tk): M padded to the sublane multiple, K split into
    balanced 128-multiple tiles that fit a double-buffered f32 feature tile
    next to the resident f32 accumulator + single-buffered f32 target gram."""
    mp = _round_up(max(m, 1), _SUBLANE)
    kp128 = _round_up(max(k, 1), _LANE)
    fixed = 2 * mp * mp * 4 + (256 << 10)        # f32 acc + resident target + slack
    avail = max(budget - fixed, 2 * mp * _LANE * 4)
    tk_max = avail // (2 * mp * 4)               # 2 buffers x 4 bytes (f32 stream)
    tk_max = max(_LANE, (tk_max // _LANE) * _LANE)
    tk_max = min(tk_max, _MAX_TK)
    steps = -(-kp128 // tk_max)                  # cdiv
    tk = _round_up(-(-max(k, 1) // steps), _LANE)
    kp = steps * tk
    return mp, kp, tk


def _pad_features(x: jax.Array, mp: int, kp: int) -> jax.Array:
    """NCHW -> zero-padded f32 (Mp, Kp) feature matrix (fused under jit)."""
    a, b, c, d = x.shape
    m, k = a * b, c * d
    f = x.reshape(m, k).astype(jnp.float32)
    if mp != m or kp != k:
        f = jnp.pad(f, ((0, mp - m), (0, kp - k)))
    return f


# -------------------- gram-matrix kernel (target construction) --------------------
def _gram_kernel(f_ref, g_ref, *, scale):
    k = pl.program_id(0)

    @pl.when(k == 0)
    def _():
        g_ref[...] = jnp.zeros_like(g_ref)

    # Stream f32 from HBM once; cast to bf16 in-register for the MXU.
    f = f_ref[...].astype(jnp.bfloat16)
    # NT matmul: G += f @ f.T without materializing any transpose.
    g_ref[...] += lax.dot_general(
        f, f,
        dimension_numbers=(((1,), (1,)), ((), ())),
        preferred_element_type=jnp.float32,
    )

    @pl.when(k == pl.num_programs(0) - 1)
    def _():
        g_ref[...] *= scale


def gram_matrix_padded(feats, mp, kp, tk, scale, vmem_limit):
    """G = (feats @ feats.T) * scale on zero-padded (Mp, Kp) f32 features."""
    return pl.pallas_call(
        functools.partial(_gram_kernel, scale=scale),
        out_shape=jax.ShapeDtypeStruct((mp, mp), jnp.float32),
        grid_spec=pltpu.PrefetchScalarGridSpec(
            num_scalar_prefetch=0,
            grid=(kp // tk,),
            in_specs=[pl.BlockSpec((mp, tk), lambda k: (0, k))],
            out_specs=pl.BlockSpec((mp, mp), lambda k: (0, 0)),
        ),
        compiler_params=pltpu.CompilerParams(
            dimension_semantics=("arbitrary",),   # K reduction, output resident
            vmem_limit_bytes=vmem_limit,
        ),
    )(feats)


# ---------------- fused gram + MSE kernel (forward-pass loss) ----------------
def _gram_mse_kernel(f_ref, t_ref, o_ref, acc_ref, *, scale, inv_n):
    k = pl.program_id(0)

    @pl.when(k == 0)
    def _():
        acc_ref[...] = jnp.zeros_like(acc_ref)

    f = f_ref[...].astype(jnp.bfloat16)
    acc_ref[...] += lax.dot_general(
        f, f,
        dimension_numbers=(((1,), (1,)), ((), ())),
        preferred_element_type=jnp.float32,
    )

    @pl.when(k == pl.num_programs(0) - 1)
    def _():
        diff = acc_ref[...] * scale - t_ref[...]
        o_ref[...] = (jnp.sum(diff * diff) * inv_n).reshape(1, 1)


def gram_mse(feats, target_gram, mp, kp, tk, scale, inv_n, vmem_limit):
    """loss = mean((gram(feats) - target_gram)^2); the gram never leaves VMEM."""
    out = pl.pallas_call(
        functools.partial(_gram_mse_kernel, scale=scale, inv_n=inv_n),
        out_shape=jax.ShapeDtypeStruct((1, 1), jnp.float32),
        grid_spec=pltpu.PrefetchScalarGridSpec(
            num_scalar_prefetch=0,
            grid=(kp // tk,),
            in_specs=[
                # streamed f32 features (double-buffered by the pipeline)
                pl.BlockSpec((mp, tk), lambda k: (0, k)),
                # resident target gram: whole array in VMEM, DMA'd once
                pl.BlockSpec(memory_space=pltpu.MemorySpace.VMEM),
            ],
            out_specs=pl.BlockSpec((1, 1), lambda k: (0, 0)),
            scratch_shapes=[pltpu.VMEM((mp, mp), jnp.float32)],
        ),
        compiler_params=pltpu.CompilerParams(
            dimension_semantics=("arbitrary",),
            vmem_limit_bytes=vmem_limit,
        ),
    )(feats, target_gram)
    return out[0, 0]


# ------------------------------ StyleLoss module ------------------------------
class StyleLoss:
    """Mirrors the PyTorch StyleLoss: stores the target gram matrix; forward
    computes gram(input), the MSE style loss (stored in self.loss), and returns
    the input unchanged."""

    def __init__(self, target_feature: jax.Array):
        self._shape = tuple(target_feature.shape)
        a, b, c, d = self._shape
        m, k = a * b, c * d
        self._m = m

        budget, vmem_limit = _vmem_budget_and_limit()
        mp, kp, tk = _choose_tiling(m, k, budget)

        # Feasibility of the resident-gram path (acc + target + streamed tiles).
        fixed_bytes = 2 * mp * mp * 4 + 2 * mp * tk * 4
        if fixed_bytes > vmem_limit:
            # TODO(synk): fall back to a row-tiled grid with per-row partial losses.
            raise NotImplementedError(
                "feature matrix too large for the resident-gram StyleLoss path")

        self._tiling = (mp, kp, tk)
        self._vmem_limit = vmem_limit
        scale = 1.0 / float(a * b * c * d)
        inv_n = 1.0 / float(m * m)   # MSE over the *unpadded* (m, m) gram

        def _target_fn(t):
            feats = _pad_features(t, mp, kp)
            return gram_matrix_padded(feats, mp, kp, tk, scale, vmem_limit)

        # .detach() in the torch code: no gradient flows through the target.
        self._target_padded = lax.stop_gradient(jax.jit(_target_fn)(target_feature))
        self.target = self._target_padded[:m, :m]   # unpadded, matches torch layout

        def _forward(x, target_padded):
            feats = _pad_features(x, mp, kp)
            return gram_mse(feats, target_padded, mp, kp, tk, scale, inv_n, vmem_limit)

        self._forward = jax.jit(_forward)
        self.loss = None

    def __call__(self, x: jax.Array) -> jax.Array:
        assert tuple(x.shape) == self._shape, "input must match target feature shape"
        self.loss = self._forward(x, self._target_padded)
        return x


# ----------------------------------- main --------------------------------------
if __name__ == "__main__":
    key = jax.random.PRNGKey(0)
    k1, k2 = jax.random.split(key)

    # NCHW, small shapes: batch=2, channels=4, spatial=16x16
    a, b, c, d = 2, 4, 16, 16
    target_feature = jax.random.normal(k1, (a, b, c, d), dtype=jnp.float32)
    x = jax.random.normal(k2, (a, b, c, d), dtype=jnp.float32)

    style = StyleLoss(target_feature)
    out = style(x)

    out = jax.block_until_ready(out)
    loss = jax.block_until_ready(style.loss)

    # Plain-JAX f32 reference; kernels use bf16 MXU inputs with f32 accumulation,
    # so compare with a correspondingly loose tolerance.
    def gram_ref(t):
        f = t.reshape(a * b, c * d)
        return (f @ f.T) / (a * b * c * d)

    loss_ref = jnp.mean((gram_ref(x) - gram_ref(target_feature)) ** 2)
    assert jnp.allclose(loss, loss_ref, rtol=5e-2, atol=1e-6), (loss, loss_ref)
    assert jnp.allclose(style.target, gram_ref(target_feature), rtol=5e-2, atol=1e-3)
    assert jnp.array_equal(out, x)   # forward returns the input unchanged

    print("KERNEL_OK")
</pallas_src>

<mosaic_0001>
module attributes {stable_mosaic.version = 11 : i64} {
  func.func @_gram_kernel(%arg0: i32, %arg1: memref<8x256xf32, #tpu.memory_space<vmem>>, %arg2: memref<8x8xf32, #tpu.memory_space<vmem>>) attributes {dimension_semantics = [#tpu.dimension_semantics<arbitrary>], iteration_bounds = array<i64: 1>, scalar_prefetch = 0 : i64, scratch_operands = 0 : i64, tpu.core_type = #tpu.core_type<tc>, window_params = [{transform_indices = @transform_0, window_bounds = array<i64: 8, 256>}, {pipeline_mode = #tpu.pipeline_mode<synchronous>, transform_indices = @transform_1, window_bounds = array<i64: 8, 8>}]} {
    %c0_i32 = arith.constant 0 : i32
    %0 = arith.cmpi eq, %arg0, %c0_i32 : i32
    %1 = arith.extui %0 : i1 to i32
    %c0_i32_0 = arith.constant 0 : i32
    %2 = arith.cmpi ne, %1, %c0_i32_0 : i32
    scf.if %2 {
      %cst_8 = arith.constant 0.000000e+00 : f32
      %12 = vector.broadcast %cst_8 : f32 to vector<8x8xf32>
      %c0_9 = arith.constant 0 : index
      %c0_10 = arith.constant 0 : index
      %13 = vector.load %arg2[%c0_9, %c0_10] : memref<8x8xf32, #tpu.memory_space<vmem>>, vector<8x8xf32>
      tpu.vector_store %arg2[%c0_9, %c0_10], %12 {strides = array<i32>} : memref<8x8xf32, #tpu.memory_space<vmem>>, vector<8x8xf32>,
    } else {
    }
    %c0 = arith.constant 0 : index
    %c0_1 = arith.constant 0 : index
    %3 = vector.load %arg1[%c0, %c0_1] : memref<8x256xf32, #tpu.memory_space<vmem>>, vector<8x256xf32>
    %4 = arith.truncf %3 : vector<8x256xf32> to vector<8x256xbf16>
    %c0_2 = arith.constant 0 : index
    %c0_3 = arith.constant 0 : index
    %5 = vector.load %arg2[%c0_2, %c0_3] : memref<8x8xf32, #tpu.memory_space<vmem>>, vector<8x8xf32>
    %cst = arith.constant dense<0.000000e+00> : vector<8x8xf32>
    %6 = tpu.matmul %4, %4, %cst {dimension_numbers = #tpu.dot_dimension_numbers<[1], [1], [0], [0], [0, 0, 1, 0], [], []>} : vector<8x256xbf16>, vector<8x256xbf16>, vector<8x8xf32> -> vector<8x8xf32>
    %7 = arith.addf %5, %6 : vector<8x8xf32>
    %c0_4 = arith.constant 0 : index
    %c0_5 = arith.constant 0 : index
    %8 = vector.load %arg2[%c0_4, %c0_5] : memref<8x8xf32, #tpu.memory_space<vmem>>, vector<8x8xf32>
    tpu.vector_store %arg2[%c0_4, %c0_5], %7 {strides = array<i32>} : memref<8x8xf32, #tpu.memory_space<vmem>>, vector<8x8xf32>,
    %c0_i32_6 = arith.constant 0 : i32
    %9 = arith.cmpi eq, %arg0, %c0_i32_6 : i32
    %10 = arith.extui %9 : i1 to i32
    %c0_i32_7 = arith.constant 0 : i32
    %11 = arith.cmpi ne, %10, %c0_i32_7 : i32
    scf.if %11 {
      %c0_8 = arith.constant 0 : index
      %c0_9 = arith.constant 0 : index
      %12 = vector.load %arg2[%c0_8, %c0_9] : memref<8x8xf32, #tpu.memory_space<vmem>>, vector<8x8xf32>
      %cst_10 = arith.constant 4.8828125E-4 : f32
      %13 = vector.broadcast %cst_10 : f32 to vector<8x8xf32>
      %14 = arith.mulf %12, %13 : vector<8x8xf32>
      %c0_11 = arith.constant 0 : index
      %c0_12 = arith.constant 0 : index
      %15 = vector.load %arg2[%c0_11, %c0_12] : memref<8x8xf32, #tpu.memory_space<vmem>>, vector<8x8xf32>
      tpu.vector_store %arg2[%c0_11, %c0_12], %14 {strides = array<i32>} : memref<8x8xf32, #tpu.memory_space<vmem>>, vector<8x8xf32>,
    } else {
    }
    return
  }
  func.func @transform_0(%arg0: i32) -> (i32, i32) {
    %c0_i32 = arith.constant 0 : i32
    %c0_i32_0 = arith.constant 0 : i32
    return %c0_i32, %arg0 : i32, i32
  }
  func.func @transform_1(%arg0: i32) -> (i32, i32) {
    %c0_i32 = arith.constant 0 : i32
    %c0_i32_0 = arith.constant 0 : i32
    %c0_i32_1 = arith.constant 0 : i32
    return %c0_i32, %c0_i32_0 : i32, i32
  }
}

</mosaic_0001>

<bundles_post_ra>
// kernel: _target_fn.1
= control target key start
LH: loop header
LB: loop body
LE: loop exit
PB: predicated region body
PF: predicated region fallthrough
CT: control target
= control target key end

     0   :  { %vm14_vm0 = vcmask 64512   ;;  %s132_s0 = inlined_call_operand.vmem [shape: f32[8,256], index: 0, kind: input, shape index: {}]   ;;  %s133_s1 = inlined_call_operand.hbm [shape: f32[8,8], index: 1, kind: output, shape index: {}]  }
   0x1   :  { %v17_v0 = vld [vmem:[%s132_s0 + $0x8] sm:$0xff]  ;;  %v16_v1 = vld [vmem:[%s132_s0] sm:$0xff] }
   0x2   :  { %6 = vsyncpa [#allocation3], 0  ;;  %v19_v2 = vpack.c.bf16 %v17_v0, %v17_v0  ;;  %v18_v3 = vpack.c.bf16 %v16_v1, %v16_v1  ;;  %v108_v4 = vmov 0.0   ;;  %s109_s0 = smov [#allocation2]  }
   0x3   :  { %15 = vst.msk [vmem:[#allocation2] sm:$0xff] %vm14_vm0, %v108_v4  ;;  %s76_s10 = sshll.u32 %s109_s0, 4  ;;  %s77_s10 = int_to_ptr.vmem [resolvable:$true] %s76_s10 }
   0x4   :  { %35 = vmatprep.subr.bf16.mxu0 %v19_v2  ;;  %53 = vmatprep.mubr.bf16.mxu0 %v19_v2  ;;  %s86_s11 = scalar_lea.vmem %s77_s10, 128  ;;  %p91_p1 = scmp.lt.s32.totalorder %s77_s10, %s77_s10 }
   0x5   :  { %36 = vmatpush1.bf16.xpose.msra.mxu0 %v18_v3  ;;  %p87_p0 = scmp.ne.s32.totalorder %s77_s10, %s86_s11  ;;  %p92_p2 = scmp.lt.s32.totalorder %s86_s11, %s86_s11 }
   0x7   :  { %p93_p3 = por %p92_p2, %p91_p1 }
   0x9   :  { %p94_p4 = pnand %p93_p3, %p87_p0 }
   0xa   :  { %v20_v5 = vld [vmem:[#allocation2] sm:$0xff] }
   0xc   :  { %54 = vmatmul.mubr.bf16.vlgmr.msra.gmra.mxu0 %v18_v3 }
  0xcc   :  { %v55_v6 = vpop.f32.mrf.mxu0 }
  0xcd   :  { %v61_v7 = vadd.f32 %v55_v6, %v20_v5 }
  0xce   :  { %v57_v8 = vpop.f32.mrf.mxu0 }
  0xcf   :  { %63 = vst.msk [vmem:[#allocation2] sm:$0xff] %vm14_vm0, %v61_v7 }
  0xd0   :  { %v58_v9 = vpop.f32.mrf.mxu0 }
  0xd2   :  { %v59_v10 = vpop.f32.mrf.mxu0 }
  0xd6   :  { %v67_v11 = vld [vmem:[#allocation2] sm:$0xff] }
  0xd7   :  { %v68_v12 = vmul.f32 0.00048828125, %v67_v11 }
  0xd9   :  { %69 = vst.msk [vmem:[#allocation2] sm:$0xff] %vm14_vm0, %v68_v12 }
  0xda   :  { %97 = shalt.err (!%p94_p4)
}
  0xdb   :  { %79 = dma.vmem_to_hbm [thread:$0]  %s77_s10, 128, %s133_s1, [#allocation3]  }
  0xdc   :  { %106 = dma.done.wait [#allocation3], 128  }
  0xdd   :  { %107 = vsyncadd [#allocation3], 4294967168 }
  0xde   :  { %83 = vsyncpa [#allocation3], 1 }

</bundles_post_ra>
